<compile_context>
chip_gen: v7x
topology: tpu7x:2x2x1
jax: 0.10.0
libtpu: 0.0.40
codegen_flags: <defaults>
</compile_context>

<pallas_src>
import jax
import jax.numpy as jnp
from jax import lax
from jax.experimental import pallas as pl
from jax.experimental.pallas import tpu as pltpu


def _make_kernel(*, W, HW, BP, P, G1, acc_r, do_x, do_y, need_plane_mask):
    WX = HW - 1        # width of the dx term (pairs (k, k+1))
    WY = HW - W        # width of the dy term (pairs (k, k+W))

    def fold(g, width):
        # (BP, width) -> (acc_r, width) using only vreg-wise VPU adds
        # (the reshape is a layout-preserving split of the sublane-major dim).
        if acc_r == BP:
            return g
        return g.reshape(BP // acc_r, acc_r, width).sum(axis=0)

    def kernel(x_ref, sx_ref, sy_ref):
        i = pl.program_id(1)

        @pl.when(i == 0)
        def _init():
            sx_ref[...] = jnp.zeros_like(sx_ref)
            sy_ref[...] = jnp.zeros_like(sy_ref)

        x = x_ref[...].astype(jnp.float32)            # (BP, HW), f32 compute

        if need_plane_mask:
            # first logical plane index held by this (possibly padded) block
            base = (pl.program_id(0) * G1 + i) * BP

        if do_x:
            dx = jnp.abs(x[:, :-1] - x[:, 1:])        # (BP, HW-1)
            kx = lax.broadcasted_iota(jnp.int32, (BP, WX), 1)
            vx = (kx % W) != (W - 1)                  # drop pairs wrapping a row
            if need_plane_mask:
                jx = lax.broadcasted_iota(jnp.int32, (BP, WX), 0)
                vx = jnp.logical_and(vx, (base + jx) < P)
            sx_ref[...] += fold(jnp.where(vx, dx, 0.0), WX)

        if do_y:
            dy = jnp.abs(x[:, :-W] - x[:, W:])        # (BP, HW-W), all in-plane
            if need_plane_mask:
                jy = lax.broadcasted_iota(jnp.int32, (BP, WY), 0)
                dy = jnp.where((base + jy) < P, dy, 0.0)
            sy_ref[...] += fold(dy, WY)

    return kernel


def gradient_loss(a, *, target_block_bytes=2 * 1024 * 1024):
    """Pallas TPU implementation of GradientLoss.forward for NCHW input."""
    N, C, H, W = a.shape
    P, HW = N * C, H * W
    x2 = a.reshape(P, HW)                 # free reshape: one row == one plane

    # ---- planes per block: big blocks, sublane dim a multiple of 8 (or == P) --
    itemsize = jnp.dtype(a.dtype).itemsize
    bp_target = max(1, target_block_bytes // max(HW * itemsize, 1))
    if bp_target >= P:
        BP = P
    else:
        BP = (bp_target // 8) * 8
        if BP == 0:
            BP = min(8, P)
    # TODO(synk): gigantic single planes (H*W*4 >> VMEM) would need intra-plane
    # column tiling with a 1-row halo; not needed for typical image sizes.
    NB = pl.cdiv(P, BP)                   # number of plane-blocks

    # ---- grid: leading parallel axis so v7x's 2 TensorCores split the work ----
    G0 = 2 if NB >= 2 else 1
    G1 = pl.cdiv(NB, G0)
    need_clamp = G0 * G1 > NB             # padded (duplicate) block indices exist
    need_plane_mask = G0 * G1 * BP > P    # padded plane rows exist

    # ---- accumulator rows: fold each block to (acc_r, width) with VPU adds ----
    acc_r = 8 if (BP > 8 and BP % 8 == 0) else BP

    do_x = W >= 2
    do_y = H >= 2
    WX = max(HW - 1, 1)
    WY = max(HW - W, 1)

    if need_clamp:
        def in_map(p, i):
            return (jnp.minimum(p * G1 + i, NB - 1), 0)
    else:
        def in_map(p, i):
            return (p * G1 + i, 0)

    kernel = _make_kernel(W=W, HW=HW, BP=BP, P=P, G1=G1, acc_r=acc_r,
                          do_x=do_x, do_y=do_y, need_plane_mask=need_plane_mask)

    flops = 6 * P * HW                       # ~2 terms x (sub + abs + add)
    bytes_accessed = P * HW * itemsize + 2 * G0 * acc_r * HW * 4

    sx, sy = pl.pallas_call(
        kernel,
        out_shape=(jax.ShapeDtypeStruct((G0 * acc_r, WX), jnp.float32),
                   jax.ShapeDtypeStruct((G0 * acc_r, WY), jnp.float32)),
        grid=(G0, G1),
        in_specs=[pl.BlockSpec((BP, HW), in_map)],
        out_specs=(pl.BlockSpec((acc_r, WX), lambda p, i: (p, 0)),
                   pl.BlockSpec((acc_r, WY), lambda p, i: (p, 0))),
        compiler_params=pltpu.CompilerParams(
            dimension_semantics=("parallel", "arbitrary")),
        cost_estimate=pl.CostEstimate(flops=flops, transcendentals=0,
                                      bytes_accessed=bytes_accessed),
    )(x2)

    count_x = P * H * (W - 1)
    count_y = P * (H - 1) * W
    # NOTE: H == 1 or W == 1 divides by zero -> NaN, matching torch.mean of an
    # empty tensor.
    return jnp.sum(sx) / count_x + jnp.sum(sy) / count_y


def gradient_loss_ref(a):
    """Pure-JAX reference matching the PyTorch forward."""
    gx = jnp.abs(a[:, :, :, :-1] - a[:, :, :, 1:])
    gy = jnp.abs(a[:, :, :-1, :] - a[:, :, 1:, :])
    return jnp.mean(gx) + jnp.mean(gy)


if __name__ == "__main__":
    key = jax.random.PRNGKey(0)
    x = jax.random.normal(key, (2, 4, 16, 16), dtype=jnp.float32)

    out = jax.jit(gradient_loss)(x)
    out = jax.block_until_ready(out)

    ref = gradient_loss_ref(x)
    assert jnp.allclose(out, ref, rtol=1e-5, atol=1e-5), (out, ref)

    print("KERNEL_OK")
</pallas_src>

<mosaic_0001>
module attributes {stable_mosaic.version = 11 : i64} {
  func.func @kernel(%arg0: i32, %arg1: i32, %arg2: memref<8x256xf32, #tpu.memory_space<vmem>>, %arg3: memref<8x255xf32, #tpu.memory_space<vmem>>, %arg4: memref<8x240xf32, #tpu.memory_space<vmem>>) attributes {dimension_semantics = [#tpu.dimension_semantics<parallel>, #tpu.dimension_semantics<arbitrary>], iteration_bounds = array<i64: 1, 1>, scalar_prefetch = 0 : i64, scratch_operands = 0 : i64, tpu.core_type = #tpu.core_type<tc>, window_params = [{transform_indices = @transform_0, window_bounds = array<i64: 8, 256>}, {transform_indices = @transform_1, window_bounds = array<i64: 8, 255>}, {transform_indices = @transform_2, window_bounds = array<i64: 8, 240>}]} {
    %c0_i32 = arith.constant 0 : i32
    %0 = arith.cmpi eq, %arg1, %c0_i32 : i32
    %1 = arith.extui %0 : i1 to i32
    %c0_i32_0 = arith.constant 0 : i32
    %2 = arith.cmpi ne, %1, %c0_i32_0 : i32
    scf.if %2 {
      %cst_14 = arith.constant 0.000000e+00 : f32
      %39 = vector.broadcast %cst_14 : f32 to vector<8x255xf32>
      %c0_15 = arith.constant 0 : index
      %c0_16 = arith.constant 0 : index
      %40 = vector.load %arg3[%c0_15, %c0_16] : memref<8x255xf32, #tpu.memory_space<vmem>>, vector<8x255xf32>
      tpu.vector_store %arg3[%c0_15, %c0_16], %39 {strides = array<i32>} : memref<8x255xf32, #tpu.memory_space<vmem>>, vector<8x255xf32>,
      %cst_17 = arith.constant 0.000000e+00 : f32
      %41 = vector.broadcast %cst_17 : f32 to vector<8x240xf32>
      %c0_18 = arith.constant 0 : index
      %c0_19 = arith.constant 0 : index
      %42 = vector.load %arg4[%c0_18, %c0_19] : memref<8x240xf32, #tpu.memory_space<vmem>>, vector<8x240xf32>
      tpu.vector_store %arg4[%c0_18, %c0_19], %41 {strides = array<i32>} : memref<8x240xf32, #tpu.memory_space<vmem>>, vector<8x240xf32>,
    } else {
    }
    %c0 = arith.constant 0 : index
    %c0_1 = arith.constant 0 : index
    %3 = vector.load %arg2[%c0, %c0_1] : memref<8x256xf32, #tpu.memory_space<vmem>>, vector<8x256xf32>
    %4 = vector.extract_strided_slice %3 {offsets = [0, 0], sizes = [8, 255], strides = [1, 1]} : vector<8x256xf32> to vector<8x255xf32>
    %5 = vector.extract_strided_slice %3 {offsets = [0, 1], sizes = [8, 255], strides = [1, 1]} : vector<8x256xf32> to vector<8x255xf32>
    %6 = arith.subf %4, %5 : vector<8x255xf32>
    %7 = math.absf %6 : vector<8x255xf32>
    %8 = tpu.iota {dimensions = array<i32: 1>} : vector<8x255xi32>
    %c16_i32 = arith.constant 16 : i32
    %c0_i32_2 = arith.constant 0 : i32
    %9 = arith.cmpi eq, %c16_i32, %c0_i32_2 : i32
    %c1_i32 = arith.constant 1 : i32
    %10 = arith.select %9, %c1_i32, %c16_i32 : i32
    %11 = vector.broadcast %10 : i32 to vector<8x255xi32>
    %12 = arith.remsi %8, %11 : vector<8x255xi32>
    %c0_i32_3 = arith.constant 0 : i32
    %13 = vector.broadcast %c0_i32_3 : i32 to vector<8x255xi32>
    %14 = arith.cmpi ne, %12, %13 : vector<8x255xi32>
    %c0_i32_4 = arith.constant 0 : i32
    %15 = vector.broadcast %c0_i32_4 : i32 to vector<8x255xi32>
    %16 = arith.cmpi slt, %12, %15 : vector<8x255xi32>
    %c0_i32_5 = arith.constant 0 : i32
    %17 = arith.cmpi slt, %10, %c0_i32_5 : i32
    %18 = vector.broadcast %17 : i1 to vector<8x255xi1>
    %19 = vector.broadcast %18 : vector<8x255xi1> to vector<8x255xi1>
    %20 = arith.xori %16, %19 : vector<8x255xi1>
    %21 = arith.andi %20, %14 : vector<8x255xi1>
    %22 = vector.broadcast %10 : i32 to vector<8x255xi32>
    %23 = arith.addi %12, %22 : vector<8x255xi32>
    %24 = arith.select %21, %23, %12 : vector<8x255xi1>, vector<8x255xi32>
    %c15_i32 = arith.constant 15 : i32
    %25 = vector.broadcast %c15_i32 : i32 to vector<8x255xi32>
    %26 = arith.cmpi ne, %24, %25 : vector<8x255xi32>
    %c0_6 = arith.constant 0 : index
    %c0_7 = arith.constant 0 : index
    %27 = vector.load %arg3[%c0_6, %c0_7] : memref<8x255xf32, #tpu.memory_space<vmem>>, vector<8x255xf32>
    %cst = arith.constant 0.000000e+00 : f32
    %28 = vector.broadcast %cst : f32 to vector<8x255xf32>
    %29 = arith.select %26, %7, %28 : vector<8x255xi1>, vector<8x255xf32>
    %30 = arith.addf %27, %29 : vector<8x255xf32>
    %c0_8 = arith.constant 0 : index
    %c0_9 = arith.constant 0 : index
    %31 = vector.load %arg3[%c0_8, %c0_9] : memref<8x255xf32, #tpu.memory_space<vmem>>, vector<8x255xf32>
    tpu.vector_store %arg3[%c0_8, %c0_9], %30 {strides = array<i32>} : memref<8x255xf32, #tpu.memory_space<vmem>>, vector<8x255xf32>,
    %32 = vector.extract_strided_slice %3 {offsets = [0, 0], sizes = [8, 240], strides = [1, 1]} : vector<8x256xf32> to vector<8x240xf32>
    %33 = vector.extract_strided_slice %3 {offsets = [0, 16], sizes = [8, 240], strides = [1, 1]} : vector<8x256xf32> to vector<8x240xf32>
    %34 = arith.subf %32, %33 : vector<8x240xf32>
    %35 = math.absf %34 : vector<8x240xf32>
    %c0_10 = arith.constant 0 : index
    %c0_11 = arith.constant 0 : index
    %36 = vector.load %arg4[%c0_10, %c0_11] : memref<8x240xf32, #tpu.memory_space<vmem>>, vector<8x240xf32>
    %37 = arith.addf %36, %35 : vector<8x240xf32>
    %c0_12 = arith.constant 0 : index
    %c0_13 = arith.constant 0 : index
    %38 = vector.load %arg4[%c0_12, %c0_13] : memref<8x240xf32, #tpu.memory_space<vmem>>, vector<8x240xf32>
    tpu.vector_store %arg4[%c0_12, %c0_13], %37 {strides = array<i32>} : memref<8x240xf32, #tpu.memory_space<vmem>>, vector<8x240xf32>,
    return
  }
  func.func @transform_0(%arg0: i32, %arg1: i32) -> (i32, i32) {
    %c1_i32 = arith.constant 1 : i32
    %0 = arith.muli %arg0, %c1_i32 : i32
    %1 = arith.addi %0, %arg1 : i32
    %c0_i32 = arith.constant 0 : i32
    %c0_i32_0 = arith.constant 0 : i32
    return %1, %c0_i32 : i32, i32
  }
  func.func @transform_1(%arg0: i32, %arg1: i32) -> (i32, i32) {
    %c0_i32 = arith.constant 0 : i32
    %c0_i32_0 = arith.constant 0 : i32
    return %arg0, %c0_i32 : i32, i32
  }
  func.func @transform_2(%arg0: i32, %arg1: i32) -> (i32, i32) {
    %c0_i32 = arith.constant 0 : i32
    %c0_i32_0 = arith.constant 0 : i32
    return %arg0, %c0_i32 : i32, i32
  }
}

</mosaic_0001>

<bundles_post_ra>
// kernel: gradient_loss.1
= control target key start
LH: loop header
LB: loop body
LE: loop exit
PB: predicated region body
PF: predicated region fallthrough
CT: control target
= control target key end

     0   :  { %vm38_vm0 = vcmask 916480   ;;  %vm35_vm1 = vcmask 1039360   ;;  %v128_v1 = vmov 0.0   ;;  %s129_s15 = smov 112   ;;  %s130_s16 = smov 127   ;;  %v56_v3 = vlaneseq  ;;  %s182_s0 = inlined_call_operand.vmem [shape: f32[8,256], index: 0, kind: input, shape index: {}]   ;;  %s183_s2 = inlined_call_operand.vmem [shape: f32[8,240], index: 2, kind: output, shape index: {1}]   ;;  %s184_s1 = inlined_call_operand.vmem [shape: f32[8,255], index: 1, kind: output, shape index: {0}]  }
   0x1   :  { %v40_v0 = vld [vmem:[%s182_s0] sm:$0xff]  ;;  %39 = vst.msk [vmem:[%s183_s2 + $0x8] sm:$0xff] %vm38_vm0, %v128_v1  ;;  %v41_v2 = vld [vmem:[%s182_s0 + $0x8] sm:$0xff] }
   0x2   :  { %36 = vst.msk [vmem:[%s184_s1 + $0x8] sm:$0xff] %vm35_vm1, %v128_v1  ;;  %93 = vrot.lane.b32.xlu1 %v40_v0, %s129_s15  ;;  %44 = vrot.lane.b32.xlu0 %v40_v0, %s130_s16  ;;  %v57_v4 = vand.u32 127, %v56_v3 }
   0x4   :  { %v58_v5 = vadd.s32 128, %v57_v4  ;;  %v63_v9 = vand.u32 15, %v57_v4 }
   0x6   :  { %95 = vrot.lane.b32.xlu1 %v41_v2, %s129_s15  ;;  %46 = vrot.lane.b32.xlu0 %v41_v2, %s130_s16  ;;  %v70_v8 = vand.u32 15, %v58_v5  ;;  %vm83_vm3 = vcmp.ne.s32.totalorder %v63_v9, 15 }
   0x8   :  { %v106_v16 = vld [vmem:[%s183_s2 + $0x8] sm:$0xff]  ;;  %vm84_vm2 = vcmp.ne.s32.totalorder %v70_v8, 15 }
   0x9   :  { %v86_v20 = vld [vmem:[%s184_s1 + $0x8] sm:$0xff] }
  0x74   :  { %v94_v6 = vpop.permute.xlu1 %93  ;;  %v45_v7 = vpop.permute.xlu0 %44 }
  0x78   :  { %v96_v10 = vpop.permute.xlu1 %95  ;;  %v47_v11 = vpop.permute.xlu0 %46 }
  0x79   :  { %v98_v12 = vsel %vm38_vm0, %v94_v6, %v96_v10  ;;  %v102_v13 = vsub.f32 %v41_v2, %v96_v10  ;;  %v49_v14 = vsel %vm35_vm1, %v45_v7, %v47_v11  ;;  %v53_v15 = vsub.f32 %v41_v2, %v47_v11 }
  0x7a   :  { %v101_v17 = vsub.f32 %v40_v0, %v98_v12  ;;  %v52_v18 = vsub.f32 %v40_v0, %v49_v14 }
  0x7b   :  { %v104_v19 = vand.u32 2147483647, %v102_v13  ;;  %v55_v21 = vand.u32 2147483647, %v53_v15 }
  0x7c   :  { %v103_v22 = vand.u32 2147483647, %v101_v17  ;;  %v54_v23 = vand.u32 2147483647, %v52_v18 }
  0x7d   :  { %v108_v24 = vadd.f32 %v106_v16, %v104_v19  ;;  %v88_v25 = vsel %vm84_vm2, %v55_v21, 0.0 }
  0x7e   :  { %v87_v26 = vsel %vm83_vm3, %v54_v23, 0.0  ;;  %v90_v27 = vadd.f32 %v88_v25, %v86_v20  ;;  %109 = vst [vmem:[%s183_s2] sm:$0xff] %v103_v22 }
  0x7f   :  { %110 = vst.msk [vmem:[%s183_s2 + $0x8] sm:$0xff] %vm38_vm0, %v108_v24  ;;  %91 = vst [vmem:[%s184_s1] sm:$0xff] %v87_v26 }
  0x80   :  { %92 = vst.msk [vmem:[%s184_s1 + $0x8] sm:$0xff] %vm35_vm1, %v90_v27 }

</bundles_post_ra>
